<compile_context>
chip_gen: v7x
topology: tpu7x:2x2x1
jax: 0.10.0
libtpu: 0.0.40
codegen_flags: <defaults>
</compile_context>

<pallas_src>
import functools

import jax
import jax.numpy as jnp
from jax.experimental import pallas as pl
from jax.experimental.pallas import tpu as pltpu


def _round_up(x: int, m: int) -> int:
    return ((x + m - 1) // m) * m


def _round_down(x: int, m: int) -> int:
    return (x // m) * m


def _slp_kernel(x_ref, w_ref, b_ref, o_ref, acc_ref, *,
                apply_sigmoid: bool, f_total: int, tk: int, mask_f_tail: bool):
    # x_ref: (tm, tk) native-dtype tile, w_ref: (1, tk), b_ref: (1,) SMEM
    # scalar, o_ref: (1, tm) lane-dense output block, acc_ref: (1, tm) f32.
    k = pl.program_id(1)

    @pl.when(k == 0)
    def _():
        acc_ref[...] = jnp.zeros_like(acc_ref)

    x = x_ref[...]
    w = w_ref[...]
    if mask_f_tail:
        # Ragged last F tile: zero BOTH operands past column F so the
        # unspecified out-of-bounds values contribute exactly 0 (never NaN).
        col = k * tk + jax.lax.broadcasted_iota(jnp.int32, (1, tk), 1)
        valid = col < f_total
        x = jnp.where(valid, x, jnp.zeros_like(x))
        w = jnp.where(valid, w, jnp.zeros_like(w))

    # NT matmul: contract the F dims of w (1, tk) and x (tm, tk) -> (1, tm).
    acc_ref[...] += jax.lax.dot_general(
        w, x,
        dimension_numbers=(((1,), (1,)), ((), ())),
        preferred_element_type=jnp.float32,
    )

    @pl.when(k == pl.num_programs(1) - 1)
    def _():
        y = acc_ref[...] + b_ref[0]
        if apply_sigmoid:
            y = jax.nn.sigmoid(y)
        o_ref[...] = y.astype(o_ref.dtype)


def single_layer_perceptron(x, weight, bias, apply_sigmoid=False,
                            tile_bytes=4 * 1024 * 1024):
    """x: (B, F), weight: (1, F), bias: (1,) -> (B,)  (= squeeze(x @ W^T + b))."""
    B, F = x.shape
    out_dtype = x.dtype
    weight = jnp.asarray(weight).astype(x.dtype).reshape(1, F)   # tiny (1, F)
    bias = jnp.asarray(bias).astype(jnp.float32).reshape(1)      # SMEM scalar
    itemsize = jnp.dtype(x.dtype).itemsize

    # --- F (contraction) tile: full F if a (128, F) tile fits the byte
    # budget, otherwise the largest 128-multiple that does (innermost axis).
    max_cols = max(128, _round_down(tile_bytes // (128 * itemsize), 128))
    tk = F if F <= max_cols else max_cols
    num_k = pl.cdiv(F, tk)
    mask_f_tail = (F % tk) != 0

    # --- batch tile: fill the per-buffer byte budget (128-lane multiples).
    if B < 128:
        tm = B                       # single exact tile, no padding anywhere
    else:
        rows_budget = max(128, _round_down(tile_bytes // (tk * itemsize), 128))
        b_cols = _round_up(B, 128)
        tm = min(rows_budget, b_cols)
        # v7x has 2 TensorCores/chip: keep >= 2 batch tiles when possible.
        if b_cols >= 256:
            tm = min(tm, _round_up(b_cols // 2, 128))
    num_i = pl.cdiv(B, tm)
    b_pad = int(num_i) * tm   # only the OUTPUT is padded (4*B bytes, no x copy)

    kernel = functools.partial(
        _slp_kernel, apply_sigmoid=bool(apply_sigmoid),
        f_total=F, tk=tk, mask_f_tail=mask_f_tail)

    out = pl.pallas_call(
        kernel,
        out_shape=jax.ShapeDtypeStruct((1, b_pad), out_dtype),
        grid_spec=pltpu.PrefetchScalarGridSpec(
            num_scalar_prefetch=0,
            grid=(num_i, num_k),
            in_specs=[
                pl.BlockSpec((tm, tk), lambda i, k: (i, k)),        # x tile
                pl.BlockSpec((1, tk), lambda i, k: (0, k)),         # weight
                pl.BlockSpec(memory_space=pltpu.MemorySpace.SMEM),  # bias
            ],
            out_specs=pl.BlockSpec((1, tm), lambda i, k: (0, i)),   # lane-dense
            scratch_shapes=[pltpu.VMEM((1, tm), jnp.float32)],      # f32 acc
        ),
        compiler_params=pltpu.CompilerParams(
            # Peak VMEM < ~9 MiB (2x4 MiB x buffers + small), within every
            # generation's default scoped limit -> no vmem_limit_bytes needed.
            dimension_semantics=("parallel", "arbitrary"),
        ),
    )(x, weight, bias)

    # PyTorch .squeeze() on (B, 1) -> (B,); drop the padded batch columns
    # (they come from out-of-bounds reads of x and are never returned).
    return out[0, :B]


if __name__ == "__main__":
    key = jax.random.PRNGKey(0)
    batch, num_features = 8, 32

    kx, kw, kb = jax.random.split(key, 3)
    x = jax.random.normal(kx, (batch, num_features), dtype=jnp.float32)

    # Deterministic nn.Linear-style init: U(-1/sqrt(F), 1/sqrt(F))
    bound = 1.0 / (num_features ** 0.5)
    weight = jax.random.uniform(
        kw, (1, num_features), jnp.float32, minval=-bound, maxval=bound)
    bias = jax.random.uniform(kb, (1,), jnp.float32, minval=-bound, maxval=bound)

    y = jax.block_until_ready(
        single_layer_perceptron(x, weight, bias, apply_sigmoid=False))
    y_sig = jax.block_until_ready(
        single_layer_perceptron(x, weight, bias, apply_sigmoid=True))

    ref = (x @ weight.T + bias).reshape(batch)
    assert y.shape == (batch,)
    assert jnp.allclose(y, ref, atol=1e-5), "mismatch vs reference"
    assert jnp.allclose(y_sig, jax.nn.sigmoid(ref), atol=1e-5), "sigmoid mismatch"

    # Ragged batch: multiple batch tiles + partial boundary tile, no x padding.
    B2, F2 = 300, 32
    k1, k2, k3 = jax.random.split(jax.random.PRNGKey(1), 3)
    x2 = jax.random.normal(k1, (B2, F2), dtype=jnp.float32)
    w2 = 0.1 * jax.random.uniform(k2, (1, F2), jnp.float32, minval=-1, maxval=1)
    b2 = 0.1 * jax.random.uniform(k3, (1,), jnp.float32, minval=-1, maxval=1)
    y2 = jax.block_until_ready(single_layer_perceptron(x2, w2, b2))
    ref2 = (x2 @ w2.T + b2).reshape(B2)
    assert y2.shape == (B2,)
    assert jnp.allclose(y2, ref2, atol=1e-4), "ragged-batch mismatch"

    # Split F axis with masked ragged tail (small tile_bytes forces tk < F).
    B3, F3 = 300, 300
    k4, k5, k6 = jax.random.split(jax.random.PRNGKey(2), 3)
    x3 = jax.random.normal(k4, (B3, F3), dtype=jnp.float32)
    w3 = 0.05 * jax.random.uniform(k5, (1, F3), jnp.float32, minval=-1, maxval=1)
    b3 = 0.05 * jax.random.uniform(k6, (1,), jnp.float32, minval=-1, maxval=1)
    y3 = jax.block_until_ready(
        single_layer_perceptron(x3, w3, b3, apply_sigmoid=True,
                                tile_bytes=128 * 1024))
    ref3 = jax.nn.sigmoid((x3 @ w3.T + b3).reshape(B3))
    assert jnp.allclose(y3, ref3, atol=1e-4), "split-F mismatch"

    print("KERNEL_OK")
</pallas_src>

<mosaic_0001>
module attributes {stable_mosaic.version = 11 : i64} {
  func.func @_slp_kernel(%arg0: i32, %arg1: i32, %arg2: memref<8x32xf32, #tpu.memory_space<vmem>>, %arg3: memref<1x32xf32, #tpu.memory_space<vmem>>, %arg4: memref<1xf32, #tpu.memory_space<smem>>, %arg5: memref<1x8xf32, #tpu.memory_space<vmem>>, %arg6: memref<1x8xf32, #tpu.memory_space<vmem>>) attributes {dimension_semantics = [#tpu.dimension_semantics<parallel>, #tpu.dimension_semantics<arbitrary>], iteration_bounds = array<i64: 1, 1>, scalar_prefetch = 0 : i64, scratch_operands = 1 : i64, tpu.core_type = #tpu.core_type<tc>, window_params = [{transform_indices = @transform_0, window_bounds = array<i64: 8, 32>}, {transform_indices = @transform_1, window_bounds = array<i64: 1, 32>}, {transform_indices = @transform_2, window_bounds = array<i64: 1>}, {transform_indices = @transform_3, window_bounds = array<i64: 1, 8>}]} {
    %c0_i32 = arith.constant 0 : i32
    %0 = arith.cmpi eq, %arg1, %c0_i32 : i32
    %1 = arith.extui %0 : i1 to i32
    %c0_i32_0 = arith.constant 0 : i32
    %2 = arith.cmpi ne, %1, %c0_i32_0 : i32
    scf.if %2 {
      %cst_10 = arith.constant 0.000000e+00 : f32
      %12 = vector.broadcast %cst_10 : f32 to vector<1x8xf32>
      %c0_11 = arith.constant 0 : index
      %c0_12 = arith.constant 0 : index
      %13 = vector.load %arg6[%c0_11, %c0_12] : memref<1x8xf32, #tpu.memory_space<vmem>>, vector<1x8xf32>
      tpu.vector_store %arg6[%c0_11, %c0_12], %12 {strides = array<i32>} : memref<1x8xf32, #tpu.memory_space<vmem>>, vector<1x8xf32>,
    } else {
    }
    %c0 = arith.constant 0 : index
    %c0_1 = arith.constant 0 : index
    %3 = vector.load %arg2[%c0, %c0_1] : memref<8x32xf32, #tpu.memory_space<vmem>>, vector<8x32xf32>
    %c0_2 = arith.constant 0 : index
    %c0_3 = arith.constant 0 : index
    %4 = vector.load %arg3[%c0_2, %c0_3] : memref<1x32xf32, #tpu.memory_space<vmem>>, vector<1x32xf32>
    %c0_4 = arith.constant 0 : index
    %c0_5 = arith.constant 0 : index
    %5 = vector.load %arg6[%c0_4, %c0_5] : memref<1x8xf32, #tpu.memory_space<vmem>>, vector<1x8xf32>
    %cst = arith.constant dense<0.000000e+00> : vector<1x8xf32>
    %6 = tpu.matmul %4, %3, %cst {dimension_numbers = #tpu.dot_dimension_numbers<[1], [1], [0], [0], [0, 0, 1, 0], [], []>} : vector<1x32xf32>, vector<8x32xf32>, vector<1x8xf32> -> vector<1x8xf32>
    %7 = arith.addf %5, %6 : vector<1x8xf32>
    %c0_6 = arith.constant 0 : index
    %c0_7 = arith.constant 0 : index
    %8 = vector.load %arg6[%c0_6, %c0_7] : memref<1x8xf32, #tpu.memory_space<vmem>>, vector<1x8xf32>
    tpu.vector_store %arg6[%c0_6, %c0_7], %7 {strides = array<i32>} : memref<1x8xf32, #tpu.memory_space<vmem>>, vector<1x8xf32>,
    %c0_i32_8 = arith.constant 0 : i32
    %9 = arith.cmpi eq, %arg1, %c0_i32_8 : i32
    %10 = arith.extui %9 : i1 to i32
    %c0_i32_9 = arith.constant 0 : i32
    %11 = arith.cmpi ne, %10, %c0_i32_9 : i32
    scf.if %11 {
      %c0_10 = arith.constant 0 : index
      %c0_11 = arith.constant 0 : index
      %12 = vector.load %arg6[%c0_10, %c0_11] : memref<1x8xf32, #tpu.memory_space<vmem>>, vector<1x8xf32>
      %c0_12 = arith.constant 0 : index
      %13 = memref.load %arg4[%c0_12] : memref<1xf32, #tpu.memory_space<smem>>
      %14 = vector.broadcast %13 : f32 to vector<1x8xf32>
      %15 = arith.addf %12, %14 : vector<1x8xf32>
      %c0_13 = arith.constant 0 : index
      %c0_14 = arith.constant 0 : index
      %16 = vector.load %arg5[%c0_13, %c0_14] : memref<1x8xf32, #tpu.memory_space<vmem>>, vector<1x8xf32>
      tpu.vector_store %arg5[%c0_13, %c0_14], %15 {strides = array<i32>} : memref<1x8xf32, #tpu.memory_space<vmem>>, vector<1x8xf32>,
    } else {
    }
    return
  }
  func.func @transform_0(%arg0: i32, %arg1: i32) -> (i32, i32) {
    %c0_i32 = arith.constant 0 : i32
    return %arg0, %arg1 : i32, i32
  }
  func.func @transform_1(%arg0: i32, %arg1: i32) -> (i32, i32) {
    %c0_i32 = arith.constant 0 : i32
    %c0_i32_0 = arith.constant 0 : i32
    return %c0_i32, %arg1 : i32, i32
  }
  func.func @transform_2(%arg0: i32, %arg1: i32) -> i32 {
    %c0_i32 = arith.constant 0 : i32
    %c0_i32_0 = arith.constant 0 : i32
    return %c0_i32 : i32
  }
  func.func @transform_3(%arg0: i32, %arg1: i32) -> (i32, i32) {
    %c0_i32 = arith.constant 0 : i32
    %c0_i32_0 = arith.constant 0 : i32
    return %c0_i32, %arg0 : i32, i32
  }
}

</mosaic_0001>

<bundles_post_ra>
// kernel: tpu_custom_call.1
= control target key start
LH: loop header
LB: loop body
LE: loop exit
PB: predicated region body
PF: predicated region fallthrough
CT: control target
= control target key end

     0   :  { %9 = vsyncpa [#allocation5], 0  ;;  %s258_s0 = inlined_call_operand.hbm [shape: f32[8,32], index: 0, kind: input, shape index: {}]   ;;  %s259_s1 = inlined_call_operand.vmem [shape: f32[1,32], index: 1, kind: input, shape index: {}]   ;;  %s260_s2 = inlined_call_operand.<no memory space> [shape: f32[1], index: 2, kind: input, shape index: {}]   ;;  %s261_s3 = inlined_call_operand.hbm [shape: f32[1,8], index: 3, kind: output, shape index: {}]  }
   0x1   :  { %10 = vsyncpa [#allocation6], 0  ;;  %s201_s12 = smov [#allocation4]   ;;  %s153_s16 = scalar_lea.hbm %s258_s0, 128 }
   0x2   :  { %s17_s13 = sshll.u32 %s201_s12, 4  ;;  %p154_p0 = scmp.ne.s32.totalorder %s258_s0, %s153_s16  ;;  %s18_s13 = int_to_ptr.vmem [resolvable:$true] %s17_s13 }
   0x3   :  { %p157_p1 = scmp.lt.u32.totalorder %s153_s16, %s258_s0 }
   0x5   :  { %p159_p2 = pnand %p157_p1, %p154_p0 }
   0x7   :  { %162 = shalt.err (!%p159_p2)
}
   0x8   :  { %s163_s21 = scalar_lea.vmem %s18_s13, 128  ;;  %p168_p4 = scmp.lt.s32.totalorder %s18_s13, %s18_s13 }
   0x9   :  { %p164_p3 = scmp.ne.s32.totalorder %s18_s13, %s163_s21  ;;  %p169_p5 = scmp.lt.s32.totalorder %s163_s21, %s163_s21 }
   0xb   :  { %p170_p6 = por %p169_p5, %p168_p4 }
   0xd   :  { %p171_p7 = pnand %p170_p6, %p164_p3 }
   0xf   :  { %174 = shalt.err (!%p171_p7)
}
  0x10   :  { %20 = dma.hbm_to_vmem [thread:$0]  %s258_s0, 128, %s18_s13, [#allocation5]  }
  0x11   :  { %197 = dma.done.wait [#allocation5], 128  }
  0x12   :  { %198 = vsyncadd [#allocation5], 4294967168  ;;  %vm32_vm0 = vcmask 57344   ;;  %v202_v0 = vmov 0.0   ;;  %vm203_vm1 = vmmov 0   ;;  %vm37_vm2 = vcmask 261120  }
  0x13   :  { %33 = vst.msk [vmem:[#allocation2] sm:$0x1] %vm32_vm0, %v202_v0  ;;  %144 = vmatprep.subr.mxu0 %v202_v0  ;;  %146 = vmatprep.mubr.msk.f32.mxu0 %vm203_vm1, %v202_v0  ;;  %v34_v1 = vld [vmem:[#allocation4] sm:$0xff]  ;;  %v35_v2 = vld [vmem:[%s259_s1] sm:$0x1]  ;;  %v122_v7 = vstv %s260_s2  ;;  %s204_s27 = smov [#allocation7]  }
  0x14   :  { %145 = vmatpush3.xpose.msk.msra.mxu0 %vm37_vm2, %v34_v1  ;;  %s131_s28 = sshll.u32 %s204_s27, 4  ;;  %s132_s28 = int_to_ptr.vmem [resolvable:$true] %s131_s28 }
  0x15   :  { %s175_s29 = scalar_lea.vmem %s132_s28, 16  ;;  %s179_s1 = scalar_lea.vmem %s132_s28, 32 }
  0x16   :  { %p176_p8 = scmp.ne.s32.totalorder %s132_s28, %s175_s29  ;;  %p180_p9 = scmp.lt.s32.totalorder %s132_s28, %s132_s28 }
  0x17   :  { %147 = vmatmul.mubr.msk.f32.vlgmr.msra.gmra.mrb[0].mxu0 %vm37_vm2, %v35_v2  ;;  %p181_p10 = scmp.lt.s32.totalorder %s179_s1, %s175_s29 }
  0x19   :  { %p182_p11 = por %p181_p10, %p180_p9 }
  0x1a   :  { %v36_v3 = vld [vmem:[#allocation2] sm:$0x1] }
  0x1b   :  { %p183_p12 = pnand %p182_p11, %p176_p8 }
  0xea   :  { %v110_v4 = vpop.f32.mrb[0].mxu0 }
  0xeb   :  { %v114_v5 = vadd.f32 %v110_v4, %v36_v3  ;;  %v148_v6 = vpop.f32.mrb[1].mxu0 }
  0xed   :  { %116 = vst.msk [vmem:[#allocation2] sm:$0x1] %vm32_vm0, %v114_v5 }
  0xf4   :  { %v120_v8 = vld [vmem:[#allocation2] sm:$0x1] }
  0xf5   :  { %v123_v9 = vadd.f32 %v122_v7, %v120_v8 }
  0xf7   :  { %124 = vst.msk [vmem:[#allocation7] sm:$0x1] %vm32_vm0, %v123_v9 }
  0xf8   :  { %186 = shalt.err (!%p183_p12)
}
  0xf9   :  { %s187_s5 = scalar_lea.hbm %s261_s3, 16 }
  0xfa   :  { %p188_p13 = scmp.ne.s32.totalorder %s261_s3, %s187_s5  ;;  %p191_p0 = scmp.lt.u32.totalorder %s187_s5, %s261_s3 }
  0xfc   :  { %p193_p1 = pnand %p191_p0, %p188_p13 }
  0xfe   :  { %196 = shalt.err (!%p193_p1)
}
  0xff   :  { %134 = dma.vmem_to_hbm [thread:$0]  %s132_s28, 16, %s261_s3, [#allocation6]  }
 0x100   :  { %199 = dma.done.wait [#allocation6], 16  }
 0x101   :  { %200 = vsyncadd [#allocation6], 4294967280 }
 0x102   :  { %138 = vsyncpa [#allocation5], 1 }
 0x103   :  { %139 = vsyncpa [#allocation6], 1 }

</bundles_post_ra>
